<compile_context>
chip_gen: v7x
topology: tpu7x:2x2x1
jax: 0.10.0
libtpu: 0.0.40
codegen_flags: <defaults>
</compile_context>

<pallas_src>
import functools
from typing import List, Optional, Tuple

import numpy as np

import jax
import jax.numpy as jnp
from jax import lax
from jax.experimental import pallas as pl
from jax.experimental.pallas import tpu as pltpu


BLOCK_STEPS = 8          # matvecs per convergence check (amortization factor)


# ---------------------------------------------------------------------------
# Kernel
# ---------------------------------------------------------------------------
def _rca_kernel(m_hbm_ref, r0_ref, out_ref, m_vmem, *, restart_prob,
                max_iter, convergence_threshold, block_steps):
    # One HBM -> VMEM copy of the pre-scaled, pre-transposed iteration matrix.
    # Single residency by construction (ANY-space input + explicit scratch).
    pltpu.sync_copy(m_hbm_ref, m_vmem)
    M = m_vmem[...]                                    # (n_pad, n_pad)

    r0 = r0_ref[...]                                   # (1, n_pad) f32 one-hot
    restart = jnp.float32(restart_prob) * r0           # hoisted out of the loop
    thr2 = jnp.float32(convergence_threshold) ** 2
    needs_mask = (max_iter % block_steps) != 0         # static Python bool

    def matvec(rt):
        # rt_next = rt @ M + rp * r0 : canonical (1,n)x(n,n) MXU contraction,
        # k = M's sublane dim (no per-iteration transpose / relayout).
        prod = lax.dot_general(rt.astype(M.dtype), M,
                               dimension_numbers=(((1,), (0,)), ((), ())),
                               preferred_element_type=jnp.float32)
        return prod + restart

    def cond(carry):
        i, _, _, done = carry
        return jnp.logical_and(i < max_iter, done == 0)

    def body(carry):
        i, rt_prev, rt, _ = carry

        def inner(k, pair):
            rt_p, rt_c = pair
            rt_n = matvec(rt_c)
            if needs_mask:
                # Preserve exact max_iter semantics on the final partial block.
                # Scalar-cond (1,n) selects: pure VPU, no loop serialization.
                active = (i + k) < jnp.int32(max_iter)
                rt_n = jnp.where(active, rt_n, rt_c)
                rt_c = jnp.where(active, rt_c, rt_p)
            return rt_c, rt_n

        rt_prev, rt = lax.fori_loop(0, block_steps, inner, (rt_prev, rt),
                                    unroll=True)

        # One cross-lane reduce / vreg->sreg round trip per BLOCK, not per step.
        diff = rt - rt_prev
        conv = jnp.sum(diff * diff) < thr2
        return i + jnp.int32(block_steps), rt_prev, rt, conv.astype(jnp.int32)

    _, rt_prev, rt, done = lax.while_loop(
        cond, body, (jnp.int32(0), r0, r0, jnp.int32(0)))

    # torch breaks BEFORE `rt = rt_next`: select the carried pre-step vector
    # once, after the loop (never a per-iteration jnp.where).
    out_ref[...] = jnp.where(done > 0, rt_prev, rt)


# ---------------------------------------------------------------------------
# Wrapper
# ---------------------------------------------------------------------------
def _round_up(x: int, mult: int) -> int:
    return ((x + mult - 1) // mult) * mult


def _vmem_capacity_bytes() -> int:
    """Per-core VMEM capacity (v5e/v6e 128 MiB, v7x 64 MiB)."""
    try:
        info = pltpu.get_tpu_info()
        for attr in ("vmem_capacity_bytes", "vmem_size_bytes"):
            cap = getattr(info, attr, None)
            if cap:
                return int(cap)
    except Exception:
        pass
    return 64 << 20          # conservative fallback: v7x per-TensorCore VMEM


@functools.partial(
    jax.jit,
    static_argnames=("n", "beta", "restart_prob", "max_iter",
                     "convergence_threshold", "block_steps", "use_bf16_matrix"))
def _rwr_pallas(adj, kpi_idx, *, n, beta, restart_prob, max_iter,
                convergence_threshold, block_steps=BLOCK_STEPS,
                use_bf16_matrix=False):
    """Steady-state probability vector of the RWR, shape (n,)."""
    n_pad = max(128, _round_up(n, 128))
    adj = adj.astype(jnp.float32)

    # Eq. 19 + the (1 - restart_prob) factor, folded and transposed host-side
    # (XLA) so the kernel's per-iteration work is exactly one canonical MXU
    # contraction:  M[j, i] = (1 - rp) * beta * adj[i, j] / clamp(col_sum[j]).
    col_sum = jnp.maximum(jnp.sum(adj, axis=0, keepdims=True),
                          jnp.float32(1e-12))                       # (1, n)
    m = (jnp.float32((1.0 - restart_prob) * beta) * (adj / col_sum)).T
    if n_pad != n:
        # Padded rows/cols of M are exactly zero -> padded rt entries stay 0,
        # so rankings over the original n entities are unchanged.
        m = jnp.zeros((n_pad, n_pad), jnp.float32).at[:n, :n].set(m)
    m_dtype = jnp.bfloat16 if use_bf16_matrix else jnp.float32
    m = m.astype(m_dtype)

    r0 = jnp.zeros((1, n_pad), jnp.float32).at[0, kpi_idx].set(1.0)

    kernel = functools.partial(
        _rca_kernel,
        restart_prob=restart_prob,
        max_iter=max_iter,
        convergence_threshold=convergence_threshold,
        block_steps=block_steps,
    )

    m_bytes = n_pad * n_pad * jnp.dtype(m_dtype).itemsize
    vec_bytes = 4 * n_pad
    # Exactly one resident matrix (VMEM scratch) + a handful of (1, n) vectors
    # + headroom, capped a few MiB under the physical per-core VMEM.
    cap = _vmem_capacity_bytes()
    vmem_limit = max(4 << 20,
                     min(m_bytes + 32 * vec_bytes + (2 << 20), cap - (2 << 20)))

    out = pl.pallas_call(
        kernel,
        out_shape=jax.ShapeDtypeStruct((1, n_pad), jnp.float32),
        in_specs=[
            pl.BlockSpec(memory_space=pl.ANY),            # M: raw HBM ref ...
            pl.BlockSpec((1, n_pad), lambda: (0, 0)),     # one-hot restart vec
        ],
        out_specs=pl.BlockSpec((1, n_pad), lambda: (0, 0)),
        scratch_shapes=[pltpu.VMEM((n_pad, n_pad), m_dtype)],  # ... one VMEM copy
        compiler_params=pltpu.CompilerParams(vmem_limit_bytes=vmem_limit),
        cost_estimate=pl.CostEstimate(
            flops=2 * n_pad * n_pad * max_iter,
            transcendentals=0,
            bytes_accessed=m_bytes + 4 * vec_bytes),
    )(m, r0)

    # TODO(synk): for several KPI seeds, batch restart vectors into a (B, n_pad)
    # rt (B >= 8 sublanes) for near-free extra MXU row utilization; for graphs
    # too large for one core's VMEM (esp. v7x 64 MiB), row-shard M across the
    # two TensorCores via pl.core_map with a per-iteration rt exchange instead
    # of re-streaming M from HBM.
    return out[0, :n]


# ---------------------------------------------------------------------------
# Module (host-side glue identical to the torch reference)
# ---------------------------------------------------------------------------
class RootCauseIdentification:
    """JAX/Pallas port of the torch RootCauseIdentification module."""

    def __init__(self, n_entities: int, beta: float = 0.5,
                 restart_prob: float = 0.3, max_iter: int = 100,
                 convergence_threshold: float = 1e-06, top_k: int = 5,
                 rbo_threshold: float = 0.9, use_bf16_matrix: bool = False):
        self.n_entities = n_entities
        self.beta = beta
        self.restart_prob = restart_prob
        self.max_iter = max_iter
        self.convergence_threshold = convergence_threshold
        self.top_k = top_k
        self.rbo_threshold = rbo_threshold
        self.use_bf16_matrix = use_bf16_matrix

    def rank_root_causes(self, steady_state_prob: np.ndarray,
                         exclude_indices: Optional[List[int]] = None
                         ) -> Tuple[List[int], List[float]]:
        probs = np.array(steady_state_prob, dtype=np.float64)
        if exclude_indices:
            probs[exclude_indices] = -np.inf
        indices = np.argsort(-probs)[:self.top_k]
        top_k_indices = [int(i) for i in indices]
        # NOTE: reference module returns float(-probs[i]); reproduced verbatim.
        top_k_probs = [float(-probs[i]) for i in top_k_indices]
        return top_k_indices, top_k_probs

    def compute_rank_similarity(self, current_ranking: List[int],
                                previous_ranking: List[int]) -> float:
        if not previous_ranking:
            return 0.0
        p = 0.9
        rbo = 0.0
        weight = 1.0
        for k in range(min(len(current_ranking), len(previous_ranking))):
            current_set = set(current_ranking[:k + 1])
            previous_set = set(previous_ranking[:k + 1])
            overlap = len(current_set.intersection(previous_set)) / (k + 1)
            rbo += weight * overlap
            weight *= p
        return rbo

    def check_stopping_criterion(self, current_ranking: List[int],
                                 previous_rankings: List[List[int]],
                                 n_consecutive: int = 3) -> bool:
        if len(previous_rankings) < n_consecutive:
            return False
        for prev_ranking in previous_rankings[-n_consecutive:]:
            similarity = self.compute_rank_similarity(current_ranking, prev_ranking)
            if similarity < self.rbo_threshold:
                return False
        return True

    def forward(self, adj: jnp.ndarray, kpi_idx: int,
                previous_rankings: Optional[List[List[int]]] = None
                ) -> Tuple[List[int], List[float], bool]:
        steady_state_prob = _rwr_pallas(
            adj, jnp.int32(kpi_idx),
            n=self.n_entities,
            beta=self.beta,
            restart_prob=self.restart_prob,
            max_iter=self.max_iter,
            convergence_threshold=self.convergence_threshold,
            use_bf16_matrix=self.use_bf16_matrix,
        )
        steady_state_prob = jax.block_until_ready(steady_state_prob)

        ranked_indices, ranked_probs = self.rank_root_causes(
            np.asarray(steady_state_prob), exclude_indices=[kpi_idx])

        should_stop = False
        if previous_rankings is not None:
            should_stop = self.check_stopping_criterion(
                ranked_indices, previous_rankings)

        return ranked_indices, ranked_probs, should_stop

    __call__ = forward


# ---------------------------------------------------------------------------
# Pure-NumPy reference (torch semantics) for validation
# ---------------------------------------------------------------------------
def _rwr_reference(adj, kpi_idx, *, beta, restart_prob, max_iter, thr):
    adj = np.asarray(adj, dtype=np.float64)
    n = adj.shape[0]
    col_sum = np.clip(adj.sum(axis=0), 1e-12, None)
    T = beta * (adj / col_sum)
    r0 = np.zeros(n, dtype=np.float64)
    r0[kpi_idx] = 1.0
    rt = r0.copy()
    for _ in range(max_iter):
        rt_next = (1.0 - restart_prob) * (T @ rt) + restart_prob * r0
        if np.linalg.norm(rt_next - rt) < thr:
            break
        rt = rt_next
    return rt


if __name__ == "__main__":
    key = jax.random.PRNGKey(0)
    n_entities = 32

    # Deterministic synthetic adjacency (non-negative weights).
    adj = jax.random.uniform(key, (n_entities, n_entities), dtype=jnp.float32)

    module = RootCauseIdentification(n_entities=n_entities)
    kpi_idx = 0
    previous_rankings = [[1, 2, 3, 4, 5], [1, 2, 3, 4, 5], [1, 2, 3, 4, 5]]

    ranked_indices, ranked_probs, should_stop = module.forward(
        adj, kpi_idx, previous_rankings)

    # Second call exercises the cached jit executable (different kpi_idx).
    ranked_indices2, _, _ = module.forward(adj, 1, previous_rankings)

    # Numerical check of the kernel against the torch-semantics reference.
    ss = jax.block_until_ready(_rwr_pallas(
        adj, jnp.int32(kpi_idx),
        n=n_entities, beta=module.beta, restart_prob=module.restart_prob,
        max_iter=module.max_iter,
        convergence_threshold=module.convergence_threshold))
    ref = _rwr_reference(np.asarray(adj), kpi_idx, beta=module.beta,
                         restart_prob=module.restart_prob,
                         max_iter=module.max_iter,
                         thr=module.convergence_threshold)
    np.testing.assert_allclose(np.asarray(ss), ref, atol=5e-5, rtol=1e-3)

    assert len(ranked_indices) == module.top_k
    assert len(ranked_probs) == module.top_k
    assert len(ranked_indices2) == module.top_k
    assert isinstance(should_stop, bool)
    assert kpi_idx not in ranked_indices          # KPI node excluded from ranking

    print("KERNEL_OK")
</pallas_src>

<mosaic_0001>
module attributes {stable_mosaic.version = 11 : i64} {
  func.func @_rca_kernel(%arg0: memref<128x128xf32, #tpu.memory_space<any>>, %arg1: memref<1x128xf32, #tpu.memory_space<vmem>>, %arg2: memref<1x128xf32, #tpu.memory_space<vmem>>, %arg3: memref<128x128xf32, #tpu.memory_space<vmem>>) attributes {dimension_semantics = [], scalar_prefetch = 0 : i64, scratch_operands = 1 : i64, tpu.core_type = #tpu.core_type<tc>} {
    "tpu.region"() ({
      %9 = tpu.sem_alloc : memref<!tpu.dma_semaphore, #tpu.memory_space<semaphore_mem>>
      tpu.enqueue_dma source(%arg0 : memref<128x128xf32, #tpu.memory_space<any>>) target(%arg3 : memref<128x128xf32, #tpu.memory_space<vmem>>) target_semaphore(%9 : memref<!tpu.dma_semaphore, #tpu.memory_space<semaphore_mem>>)
      tpu.wait_dma2 semaphore(%9 : memref<!tpu.dma_semaphore, #tpu.memory_space<semaphore_mem>>) src(%arg0 : memref<128x128xf32, #tpu.memory_space<any>>) dst(%arg3 : memref<128x128xf32, #tpu.memory_space<vmem>>)
      tpu.yield
    }) : () -> ()
    %c0 = arith.constant 0 : index
    %c0_0 = arith.constant 0 : index
    %0 = vector.load %arg3[%c0, %c0_0] : memref<128x128xf32, #tpu.memory_space<vmem>>, vector<128x128xf32>
    %c0_1 = arith.constant 0 : index
    %c0_2 = arith.constant 0 : index
    %1 = vector.load %arg1[%c0_1, %c0_2] : memref<1x128xf32, #tpu.memory_space<vmem>>, vector<1x128xf32>
    %cst = arith.constant 3.000000e-01 : f32
    %2 = vector.broadcast %cst : f32 to vector<1x128xf32>
    %3 = arith.mulf %2, %1 : vector<1x128xf32>
    %cst_3 = arith.constant 9.99999997E-7 : f32
    %4 = arith.mulf %cst_3, %cst_3 : f32
    %c0_i32 = arith.constant 0 : i32
    %c0_i32_4 = arith.constant 0 : i32
    %5:4 = scf.while (%arg4 = %c0_i32, %arg5 = %1, %arg6 = %1, %arg7 = %c0_i32_4) : (i32, vector<1x128xf32>, vector<1x128xf32>, i32) -> (i32, vector<1x128xf32>, vector<1x128xf32>, i32) {
      %c100_i32 = arith.constant 100 : i32
      %9 = arith.cmpi slt, %arg4, %c100_i32 : i32
      %c0_i32_8 = arith.constant 0 : i32
      %10 = arith.cmpi eq, %arg7, %c0_i32_8 : i32
      %11 = arith.andi %9, %10 : i1
      scf.condition(%11) %arg4, %arg5, %arg6, %arg7 : i32, vector<1x128xf32>, vector<1x128xf32>, i32
    } do {
    ^bb0(%arg4: i32, %arg5: vector<1x128xf32>, %arg6: vector<1x128xf32>, %arg7: i32):
      %c0_i32_8 = arith.constant 0 : i32
      %cst_9 = arith.constant dense<0.000000e+00> : vector<1x128xf32>
      %9 = tpu.matmul %arg6, %0, %cst_9 {dimension_numbers = #tpu.dot_dimension_numbers<[1], [0], [0], [1], [0, 0, 1, 1], [], []>} : vector<1x128xf32>, vector<128x128xf32>, vector<1x128xf32> -> vector<1x128xf32>
      %10 = arith.addf %9, %3 : vector<1x128xf32>
      %11 = arith.addi %arg4, %c0_i32_8 : i32
      %c100_i32 = arith.constant 100 : i32
      %12 = arith.cmpi slt, %11, %c100_i32 : i32
      %13 = arith.select %12, %10, %arg6 : vector<1x128xf32>
      %14 = arith.select %12, %arg6, %arg5 : vector<1x128xf32>
      %c1_i32 = arith.constant 1 : i32
      %cst_10 = arith.constant dense<0.000000e+00> : vector<1x128xf32>
      %15 = tpu.matmul %13, %0, %cst_10 {dimension_numbers = #tpu.dot_dimension_numbers<[1], [0], [0], [1], [0, 0, 1, 1], [], []>} : vector<1x128xf32>, vector<128x128xf32>, vector<1x128xf32> -> vector<1x128xf32>
      %16 = arith.addf %15, %3 : vector<1x128xf32>
      %17 = arith.addi %arg4, %c1_i32 : i32
      %c100_i32_11 = arith.constant 100 : i32
      %18 = arith.cmpi slt, %17, %c100_i32_11 : i32
      %19 = arith.select %18, %16, %13 : vector<1x128xf32>
      %20 = arith.select %18, %13, %14 : vector<1x128xf32>
      %c2_i32 = arith.constant 2 : i32
      %cst_12 = arith.constant dense<0.000000e+00> : vector<1x128xf32>
      %21 = tpu.matmul %19, %0, %cst_12 {dimension_numbers = #tpu.dot_dimension_numbers<[1], [0], [0], [1], [0, 0, 1, 1], [], []>} : vector<1x128xf32>, vector<128x128xf32>, vector<1x128xf32> -> vector<1x128xf32>
      %22 = arith.addf %21, %3 : vector<1x128xf32>
      %23 = arith.addi %arg4, %c2_i32 : i32
      %c100_i32_13 = arith.constant 100 : i32
      %24 = arith.cmpi slt, %23, %c100_i32_13 : i32
      %25 = arith.select %24, %22, %19 : vector<1x128xf32>
      %26 = arith.select %24, %19, %20 : vector<1x128xf32>
      %c3_i32 = arith.constant 3 : i32
      %cst_14 = arith.constant dense<0.000000e+00> : vector<1x128xf32>
      %27 = tpu.matmul %25, %0, %cst_14 {dimension_numbers = #tpu.dot_dimension_numbers<[1], [0], [0], [1], [0, 0, 1, 1], [], []>} : vector<1x128xf32>, vector<128x128xf32>, vector<1x128xf32> -> vector<1x128xf32>
      %28 = arith.addf %27, %3 : vector<1x128xf32>
      %29 = arith.addi %arg4, %c3_i32 : i32
      %c100_i32_15 = arith.constant 100 : i32
      %30 = arith.cmpi slt, %29, %c100_i32_15 : i32
      %31 = arith.select %30, %28, %25 : vector<1x128xf32>
      %32 = arith.select %30, %25, %26 : vector<1x128xf32>
      %c4_i32 = arith.constant 4 : i32
      %cst_16 = arith.constant dense<0.000000e+00> : vector<1x128xf32>
      %33 = tpu.matmul %31, %0, %cst_16 {dimension_numbers = #tpu.dot_dimension_numbers<[1], [0], [0], [1], [0, 0, 1, 1], [], []>} : vector<1x128xf32>, vector<128x128xf32>, vector<1x128xf32> -> vector<1x128xf32>
      %34 = arith.addf %33, %3 : vector<1x128xf32>
      %35 = arith.addi %arg4, %c4_i32 : i32
      %c100_i32_17 = arith.constant 100 : i32
      %36 = arith.cmpi slt, %35, %c100_i32_17 : i32
      %37 = arith.select %36, %34, %31 : vector<1x128xf32>
      %38 = arith.select %36, %31, %32 : vector<1x128xf32>
      %c5_i32 = arith.constant 5 : i32
      %cst_18 = arith.constant dense<0.000000e+00> : vector<1x128xf32>
      %39 = tpu.matmul %37, %0, %cst_18 {dimension_numbers = #tpu.dot_dimension_numbers<[1], [0], [0], [1], [0, 0, 1, 1], [], []>} : vector<1x128xf32>, vector<128x128xf32>, vector<1x128xf32> -> vector<1x128xf32>
      %40 = arith.addf %39, %3 : vector<1x128xf32>
      %41 = arith.addi %arg4, %c5_i32 : i32
      %c100_i32_19 = arith.constant 100 : i32
      %42 = arith.cmpi slt, %41, %c100_i32_19 : i32
      %43 = arith.select %42, %40, %37 : vector<1x128xf32>
      %44 = arith.select %42, %37, %38 : vector<1x128xf32>
      %c6_i32 = arith.constant 6 : i32
      %cst_20 = arith.constant dense<0.000000e+00> : vector<1x128xf32>
      %45 = tpu.matmul %43, %0, %cst_20 {dimension_numbers = #tpu.dot_dimension_numbers<[1], [0], [0], [1], [0, 0, 1, 1], [], []>} : vector<1x128xf32>, vector<128x128xf32>, vector<1x128xf32> -> vector<1x128xf32>
      %46 = arith.addf %45, %3 : vector<1x128xf32>
      %47 = arith.addi %arg4, %c6_i32 : i32
      %c100_i32_21 = arith.constant 100 : i32
      %48 = arith.cmpi slt, %47, %c100_i32_21 : i32
      %49 = arith.select %48, %46, %43 : vector<1x128xf32>
      %50 = arith.select %48, %43, %44 : vector<1x128xf32>
      %c7_i32 = arith.constant 7 : i32
      %cst_22 = arith.constant dense<0.000000e+00> : vector<1x128xf32>
      %51 = tpu.matmul %49, %0, %cst_22 {dimension_numbers = #tpu.dot_dimension_numbers<[1], [0], [0], [1], [0, 0, 1, 1], [], []>} : vector<1x128xf32>, vector<128x128xf32>, vector<1x128xf32> -> vector<1x128xf32>
      %52 = arith.addf %51, %3 : vector<1x128xf32>
      %53 = arith.addi %arg4, %c7_i32 : i32
      %c100_i32_23 = arith.constant 100 : i32
      %54 = arith.cmpi slt, %53, %c100_i32_23 : i32
      %55 = arith.select %54, %52, %49 : vector<1x128xf32>
      %56 = arith.select %54, %49, %50 : vector<1x128xf32>
      %c8_i32 = arith.constant 8 : i32
      %57 = arith.subf %55, %56 : vector<1x128xf32>
      %58 = arith.mulf %57, %57 : vector<1x128xf32>
      %59 = vector.shape_cast %58 : vector<1x128xf32> to vector<1x1x128xf32>
      %cst_24 = arith.constant dense<0.000000e+00> : vector<1xf32>
      %60 = vector.multi_reduction <add>, %59, %cst_24 [1, 2] : vector<1x1x128xf32> to vector<1xf32>
      %61 = vector.shape_cast %60 : vector<1xf32> to vector<1x1x1xf32>
      %62 = vector.extract %61[0, 0, 0] : f32 from vector<1x1x1xf32>
      %63 = arith.cmpf olt, %62, %4 : f32
      %c8_i32_25 = arith.constant 8 : i32
      %64 = arith.addi %arg4, %c8_i32_25 : i32
      %65 = arith.extui %63 : i1 to i32
      scf.yield %64, %56, %55, %65 : i32, vector<1x128xf32>, vector<1x128xf32>, i32
    }
    %c0_i32_5 = arith.constant 0 : i32
    %6 = arith.cmpi sgt, %5#3, %c0_i32_5 : i32
    %7 = arith.select %6, %5#1, %5#2 : vector<1x128xf32>
    %c0_6 = arith.constant 0 : index
    %c0_7 = arith.constant 0 : index
    %8 = vector.load %arg2[%c0_6, %c0_7] : memref<1x128xf32, #tpu.memory_space<vmem>>, vector<1x128xf32>
    tpu.vector_store %arg2[%c0_6, %c0_7], %7 {strides = array<i32>} : memref<1x128xf32, #tpu.memory_space<vmem>>, vector<1x128xf32>,
    return
  }
}

</mosaic_0001>

<bundles_post_ra>
// kernel: _rwr_pallas.1
= control target key start
LH: loop header
LB: loop body
LE: loop exit
PB: predicated region body
PF: predicated region fallthrough
CT: control target
= control target key end

     0   :  { %s1824_s0 = inlined_call_operand.vmem [shape: f32[128,128], index: 0, kind: input, shape index: {}]   ;;  %s1825_s1 = inlined_call_operand.vmem [shape: f32[1,128], index: 1, kind: input, shape index: {}]   ;;  %s1826_s2 = inlined_call_operand.vmem [shape: f32[1,128], index: 2, kind: output, shape index: {}]  }
   0x1   :  { %v1462_v0 = vld [vmem:[%s1824_s0] sm:$0xff]  ;;  %v1467_v1 = vld [vmem:[%s1824_s0 + $0x8] sm:$0xff]  ;;  %v1472_v2 = vld [vmem:[%s1824_s0 + $0x10] sm:$0xff] }
   0x2   :  { %v1477_v3 = vld [vmem:[%s1824_s0 + $0x18] sm:$0xff]  ;;  %v1482_v4 = vld [vmem:[%s1824_s0 + $0x20] sm:$0xff]  ;;  %v1487_v5 = vld [vmem:[%s1824_s0 + $0x28] sm:$0xff] }
   0x3   :  { %v1492_v6 = vld [vmem:[%s1824_s0 + $0x30] sm:$0xff]  ;;  %v1497_v7 = vld [vmem:[%s1824_s0 + $0x38] sm:$0xff]  ;;  %v1502_v8 = vld [vmem:[%s1824_s0 + $0x40] sm:$0xff] }
   0x4   :  { %v1507_v9 = vld [vmem:[%s1824_s0 + $0x48] sm:$0xff]  ;;  %v1512_v10 = vld [vmem:[%s1824_s0 + $0x50] sm:$0xff]  ;;  %v1517_v11 = vld [vmem:[%s1824_s0 + $0x58] sm:$0xff] }
   0x5   :  { %v1522_v12 = vld [vmem:[%s1824_s0 + $0x60] sm:$0xff]  ;;  %v1527_v13 = vld [vmem:[%s1824_s0 + $0x68] sm:$0xff]  ;;  %v1532_v14 = vld [vmem:[%s1824_s0 + $0x70] sm:$0xff] }
   0x6   :  { %v1537_v15 = vld [vmem:[%s1824_s0 + $0x78] sm:$0xff] }
   0x7   :  { %80 = vsyncadd [#allocation3], 2048 }
   0x8   :  { %1427 = dma.done.wait [#allocation3], 2048 }
   0x9   :  { %1428 = vsyncadd [#allocation3], 4294965248  ;;  %v100_v16 = vld [vmem:[%s1825_s1] sm:$0x1]   ;;  %s1548_s15 = smov 0  }
   0xa   :  { %v1542_v17 = vmul.f32 0.3, %v100_v16  ;;  %v1827_v18 = vmov %v100_v16 }
   0xb LB: > { %v1561_v19 = vpack.c.bf16 %v1467_v1, %v1462_v0  ;;  %v1441_v20 = vmov 0.0|0.0   ;;  %v1567_v21 = vpack.c.bf16 %v1477_v3, %v1472_v2  ;;  %s742_s0 = sadd.s32 8, %s1439_s15   ;;  %vm1442_vm0 = vmmov 0   ;;  %p183_p0 = scmp.lt.s32.totalorder %s1439_s15, 100  ;;  %s1439_s15 = sphi %s1548_s15, %s1832_s15   ;;  %v1435_v16 = vphi %v100_v16, %v1831_v16   ;;  %v1431_v18 = vphi %v1827_v18, %v1830_v18  }
   0xc   : > { %1194 = vmatprep.subr.bf16.mxu0 %v1441_v20  ;;  %1218 = vmatprep.subr.bf16.mxu1 %v1441_v20  ;;  %v1443_v22 = vmov 0.0   ;;  %v1581_v23 = vpack.c.bf16 %v1487_v5, %v1482_v4  ;;  %v1589_v24 = vpack.c.bf16 %v1497_v7, %v1492_v6  ;;  %v1597_v25 = vpack.c.bf16 %v1507_v9, %v1502_v8  ;;  %s259_s16 = sadd.s32 1, %s1439_s15  ;;  %s336_s18 = sadd.s32 2, %s1439_s15 }
   0xd   : > { %1196 = vmatpush3.bf16.msra.mxu0 %v1561_v19  ;;  %946 = vmatprep.mubr.msk.f32.mxu0 %vm1442_vm0, %v1443_v22  ;;  %v1605_v26 = vpack.c.bf16 %v1517_v11, %v1512_v10  ;;  %v1613_v27 = vpack.c.bf16 %v1527_v13, %v1522_v12  ;;  %v1621_v28 = vpack.c.bf16 %v1537_v15, %v1532_v14  ;;  %s184_s1 = scalar_select %p183_p0, 1, 0  ;;  %vm730_vm9 = vcmask 1040384  }
   0xe   : > { %1197 = vmatprep.subr.bf16.mxu0 %v1441_v20  ;;  %1220 = vmatpush3.bf16.msra.mxu1 %v1561_v19  ;;  %p260_p1 = scmp.lt.s32.totalorder %s259_s16, 100  ;;  %p337_p2 = scmp.lt.s32.totalorder %s336_s18, 100 }
   0xf   : > { %981 = vmatprep.mubr.msk.f32.mxu1 %vm1442_vm0, %v1443_v22  ;;  %1221 = vmatprep.subr.bf16.mxu1 %v1441_v20  ;;  %v185_v29 = vstv %s184_s1  ;;  %s413_s20 = sadd.s32 3, %s1439_s15  ;;  %s490_s22 = sadd.s32 4, %s1439_s15 }
  0x10   : > { %vm1650_vm1 = vcmp.eq.s32.totalorder %v185_v29, 1  ;;  %s261_s17 = scalar_select %p260_p1, 1, 0 }
  0x11   : > { %1199 = vmatpush3.bf16.msra.mxu0 %v1567_v21  ;;  %s338_s19 = scalar_select %p337_p2, 1, 0 }
  0x12   : > { %1200 = vmatprep.subr.bf16.mxu0 %v1441_v20  ;;  %1223 = vmatpush3.bf16.msra.mxu1 %v1567_v21  ;;  %v1680_v35 = vstv %s261_s17  ;;  %p414_p3 = scmp.lt.s32.totalorder %s413_s20, 100  ;;  %p491_p4 = scmp.lt.s32.totalorder %s490_s22, 100 }
  0x13   : > { %1224 = vmatprep.subr.bf16.mxu1 %v1441_v20  ;;  %vm263_vm2 = vcmp.eq.s32.totalorder %v1680_v35, 1  ;;  %v1709_v40 = vstv %s338_s19  ;;  %s567_s24 = sadd.s32 5, %s1439_s15  ;;  %s644_s26 = sadd.s32 6, %s1439_s15 }
  0x14   : > { %vm340_vm3 = vcmp.eq.s32.totalorder %v1709_v40, 1  ;;  %s415_s21 = scalar_select %p414_p3, 1, 0 }
  0x15   : > { %1202 = vmatpush3.bf16.msra.mxu0 %v1581_v23  ;;  %s492_s23 = scalar_select %p491_p4, 1, 0 }
  0x16   : > { %1203 = vmatprep.subr.bf16.mxu0 %v1441_v20  ;;  %1226 = vmatpush3.bf16.msra.mxu1 %v1581_v23  ;;  %v1738_v45 = vstv %s415_s21  ;;  %p568_p5 = scmp.lt.s32.totalorder %s567_s24, 100  ;;  %p645_p6 = scmp.lt.s32.totalorder %s644_s26, 100 }
  0x17   : > { %1227 = vmatprep.subr.bf16.mxu1 %v1441_v20  ;;  %vm417_vm4 = vcmp.eq.s32.totalorder %v1738_v45, 1  ;;  %v493_v50 = vstv %s492_s23  ;;  %s721_s28 = sadd.s32 7, %s1439_s15  ;;  %p107_p9 = scmp.lt.s32.totalorder %s742_s0, 100 }
  0x18   : > { %vm494_vm5 = vcmp.eq.s32.totalorder %v493_v50, 1  ;;  %s569_s25 = scalar_select %p568_p5, 1, 0 }
  0x19   : > { %1205 = vmatpush3.bf16.msra.mxu0 %v1589_v24  ;;  %s646_s27 = scalar_select %p645_p6, 1, 0 }
  0x1a   : > { %1206 = vmatprep.subr.bf16.mxu0 %v1441_v20  ;;  %1229 = vmatpush3.bf16.msra.mxu1 %v1589_v24  ;;  %v570_v55 = vstv %s569_s25  ;;  %p722_p7 = scmp.lt.s32.totalorder %s721_s28, 100  ;;  %s1832_s15 = smov %s742_s0 }
  0x1b   : > { %1230 = vmatprep.subr.bf16.mxu1 %v1441_v20  ;;  %vm571_vm6 = vcmp.eq.s32.totalorder %v570_v55, 1  ;;  %v647_v60 = vstv %s646_s27 }
  0x1c   : > { %vm648_vm7 = vcmp.eq.s32.totalorder %v647_v60, 1  ;;  %s723_s29 = scalar_select %p722_p7, 1, 0 }
  0x1d   : > { %1208 = vmatpush3.bf16.msra.mxu0 %v1597_v25 }
  0x1e   : > { %1209 = vmatprep.subr.bf16.mxu0 %v1441_v20  ;;  %1232 = vmatpush3.bf16.msra.mxu1 %v1597_v25 }
  0x1f   : > { %1233 = vmatprep.subr.bf16.mxu1 %v1441_v20 }
  0x21   : > { %1211 = vmatpush3.bf16.msra.mxu0 %v1605_v26 }
  0x22   : > { %1212 = vmatprep.subr.bf16.mxu0 %v1441_v20  ;;  %1235 = vmatpush3.bf16.msra.mxu1 %v1605_v26 }
  0x23   : > { %1236 = vmatprep.subr.bf16.mxu1 %v1441_v20 }
  0x25   : > { %1214 = vmatpush3.bf16.msra.mxu0 %v1613_v27 }
  0x26   : > { %1215 = vmatprep.subr.bf16.mxu0 %v1441_v20  ;;  %1238 = vmatpush3.bf16.msra.mxu1 %v1613_v27 }
  0x27   : > { %1239 = vmatprep.subr.bf16.mxu1 %v1441_v20 }
  0x29   : > { %1217 = vmatpush3.bf16.msra.mxu0 %v1621_v28 }
  0x2a   : > { %1242 = vmatprep.subr.bf16.mxu0 %v1441_v20  ;;  %1241 = vmatpush3.bf16.msra.mxu1 %v1621_v28 }
  0x2b   : > { %1266 = vmatprep.subr.bf16.mxu1 %v1441_v20 }
  0x2c   : > { %947 = vmatmul.mubr.f32.vlgmr.msra.gmra.mrb[0].mxu0 %v1431_v18 }
  0x2d   : > { %1244 = vmatpush3.bf16.msra.mxu0 %v1561_v19  ;;  %1016 = vmatprep.mubr.msk.f32.mxu0 %vm1442_vm0, %v1443_v22 }
  0x2e   : > { %1245 = vmatprep.subr.bf16.mxu0 %v1441_v20 }
  0x31   : > { %1247 = vmatpush3.bf16.msra.mxu0 %v1567_v21 }
  0x32   : > { %1248 = vmatprep.subr.bf16.mxu0 %v1441_v20 }
  0x35   : > { %1250 = vmatpush3.bf16.msra.mxu0 %v1581_v23 }
  0x36   : > { %1251 = vmatprep.subr.bf16.mxu0 %v1441_v20 }
  0x39   : > { %1253 = vmatpush3.bf16.msra.mxu0 %v1589_v24 }
  0x3a   : > { %1254 = vmatprep.subr.bf16.mxu0 %v1441_v20 }
  0x3d   : > { %1256 = vmatpush3.bf16.msra.mxu0 %v1597_v25 }
  0x3e   : > { %1257 = vmatprep.subr.bf16.mxu0 %v1441_v20 }
  0x41   : > { %1259 = vmatpush3.bf16.msra.mxu0 %v1605_v26 }
  0x42   : > { %1260 = vmatprep.subr.bf16.mxu0 %v1441_v20 }
  0x45   : > { %1262 = vmatpush3.bf16.msra.mxu0 %v1613_v27 }
  0x46   : > { %1263 = vmatprep.subr.bf16.mxu0 %v1441_v20 }
  0x49   : > { %1265 = vmatpush3.bf16.msra.mxu0 %v1621_v28 }
  0x4a   : > { %1290 = vmatprep.subr.bf16.mxu0 %v1441_v20 }
  0xff   : > { %v179_v31 = vpop.f32.mrb[0].mxu0 }
 0x100   : > { %v180_v32 = vadd.f32 %v179_v31, %v1542_v17  ;;  %v948_v33 = vpop.f32.mrb[1].mxu0 }
 0x102   : > { %v1658_v34 = vsel %vm1650_vm1, %v180_v32, %v1431_v18 }
 0x103   : > { %982 = vmatmul.mubr.f32.vlgmr.msra.gmra.mrb[0].mxu1 %v1658_v34 }
 0x104   : > { %1268 = vmatpush3.bf16.msra.mxu1 %v1561_v19  ;;  %1051 = vmatprep.mubr.msk.f32.mxu1 %vm1442_vm0, %v1443_v22 }
 0x105   : > { %1269 = vmatprep.subr.bf16.mxu1 %v1441_v20 }
 0x108   : > { %1271 = vmatpush3.bf16.msra.mxu1 %v1567_v21 }
 0x109   : > { %1272 = vmatprep.subr.bf16.mxu1 %v1441_v20 }
 0x10c   : > { %1274 = vmatpush3.bf16.msra.mxu1 %v1581_v23 }
 0x10d   : > { %1275 = vmatprep.subr.bf16.mxu1 %v1441_v20 }
 0x110   : > { %1277 = vmatpush3.bf16.msra.mxu1 %v1589_v24 }
 0x111   : > { %1278 = vmatprep.subr.bf16.mxu1 %v1441_v20 }
 0x114   : > { %1280 = vmatpush3.bf16.msra.mxu1 %v1597_v25 }
 0x115   : > { %1281 = vmatprep.subr.bf16.mxu1 %v1441_v20 }
 0x118   : > { %1283 = vmatpush3.bf16.msra.mxu1 %v1605_v26 }
 0x119   : > { %1284 = vmatprep.subr.bf16.mxu1 %v1441_v20 }
 0x11c   : > { %1286 = vmatpush3.bf16.msra.mxu1 %v1613_v27 }
 0x11d   : > { %1287 = vmatprep.subr.bf16.mxu1 %v1441_v20 }
 0x120   : > { %1289 = vmatpush3.bf16.msra.mxu1 %v1621_v28 }
 0x121   : > { %1314 = vmatprep.subr.bf16.mxu1 %v1441_v20 }
 0x1d6   : > { %v255_v36 = vpop.f32.mrb[0].mxu1 }
 0x1d7   : > { %v256_v37 = vadd.f32 %v255_v36, %v1542_v17  ;;  %v983_v38 = vpop.f32.mrb[1].mxu1 }
 0x1d9   : > { %v1687_v39 = vsel %vm263_vm2, %v256_v37, %v1658_v34 }
 0x1da   : > { %1017 = vmatmul.mubr.f32.vlgmr.msra.gmra.mrb[2].mxu0 %v1687_v39 }
 0x1db   : > { %1292 = vmatpush3.bf16.msra.mxu0 %v1561_v19  ;;  %1086 = vmatprep.mubr.msk.f32.mxu0 %vm1442_vm0, %v1443_v22 }
 0x1dc   : > { %1293 = vmatprep.subr.bf16.mxu0 %v1441_v20 }
 0x1df   : > { %1295 = vmatpush3.bf16.msra.mxu0 %v1567_v21 }
 0x1e0   : > { %1296 = vmatprep.subr.bf16.mxu0 %v1441_v20 }
 0x1e3   : > { %1298 = vmatpush3.bf16.msra.mxu0 %v1581_v23 }
 0x1e4   : > { %1299 = vmatprep.subr.bf16.mxu0 %v1441_v20 }
 0x1e7   : > { %1301 = vmatpush3.bf16.msra.mxu0 %v1589_v24 }
 0x1e8   : > { %1302 = vmatprep.subr.bf16.mxu0 %v1441_v20 }
 0x1eb   : > { %1304 = vmatpush3.bf16.msra.mxu0 %v1597_v25 }
 0x1ec   : > { %1305 = vmatprep.subr.bf16.mxu0 %v1441_v20 }
 0x1ef   : > { %1307 = vmatpush3.bf16.msra.mxu0 %v1605_v26 }
 0x1f0   : > { %1308 = vmatprep.subr.bf16.mxu0 %v1441_v20 }
 0x1f3   : > { %1310 = vmatpush3.bf16.msra.mxu0 %v1613_v27 }
 0x1f4   : > { %1311 = vmatprep.subr.bf16.mxu0 %v1441_v20 }
 0x1f7   : > { %1313 = vmatpush3.bf16.msra.mxu0 %v1621_v28 }
 0x1f8   : > { %1338 = vmatprep.subr.bf16.mxu0 %v1441_v20 }
 0x2ad   : > { %v332_v41 = vpop.f32.mrb[2].mxu0 }
 0x2ae   : > { %v333_v42 = vadd.f32 %v332_v41, %v1542_v17  ;;  %v1018_v43 = vpop.f32.mrb[3].mxu0 }
 0x2b0   : > { %v1716_v44 = vsel %vm340_vm3, %v333_v42, %v1687_v39 }
 0x2b1   : > { %1052 = vmatmul.mubr.f32.vlgmr.msra.gmra.mrb[2].mxu1 %v1716_v44 }
 0x2b2   : > { %1316 = vmatpush3.bf16.msra.mxu1 %v1561_v19  ;;  %1121 = vmatprep.mubr.msk.f32.mxu1 %vm1442_vm0, %v1443_v22 }
 0x2b3   : > { %1317 = vmatprep.subr.bf16.mxu1 %v1441_v20 }
 0x2b6   : > { %1319 = vmatpush3.bf16.msra.mxu1 %v1567_v21 }
 0x2b7   : > { %1320 = vmatprep.subr.bf16.mxu1 %v1441_v20 }
 0x2ba   : > { %1322 = vmatpush3.bf16.msra.mxu1 %v1581_v23 }
 0x2bb   : > { %1323 = vmatprep.subr.bf16.mxu1 %v1441_v20 }
 0x2be   : > { %1325 = vmatpush3.bf16.msra.mxu1 %v1589_v24 }
 0x2bf   : > { %1326 = vmatprep.subr.bf16.mxu1 %v1441_v20 }
 0x2c2   : > { %1328 = vmatpush3.bf16.msra.mxu1 %v1597_v25 }
 0x2c3   : > { %1329 = vmatprep.subr.bf16.mxu1 %v1441_v20 }
 0x2c6   : > { %1331 = vmatpush3.bf16.msra.mxu1 %v1605_v26 }
 0x2c7   : > { %1332 = vmatprep.subr.bf16.mxu1 %v1441_v20 }
 0x2ca   : > { %1334 = vmatpush3.bf16.msra.mxu1 %v1613_v27 }
 0x2cb   : > { %1335 = vmatprep.subr.bf16.mxu1 %v1441_v20 }
 0x2ce   : > { %1337 = vmatpush3.bf16.msra.mxu1 %v1621_v28 }
 0x2cf   : > { %1362 = vmatprep.subr.bf16.mxu1 %v1441_v20 }
 0x384   : > { %v409_v46 = vpop.f32.mrb[2].mxu1 }
 0x385   : > { %v410_v47 = vadd.f32 %v409_v46, %v1542_v17  ;;  %v1053_v48 = vpop.f32.mrb[3].mxu1 }
 0x387   : > { %v1745_v49 = vsel %vm417_vm4, %v410_v47, %v1716_v44 }
 0x388   : > { %1087 = vmatmul.mubr.f32.vlgmr.msra.gmra.mrb[4].mxu0 %v1745_v49 }
 0x389   : > { %1340 = vmatpush3.bf16.msra.mxu0 %v1561_v19  ;;  %1156 = vmatprep.mubr.msk.f32.mxu0 %vm1442_vm0, %v1443_v22 }
 0x38a   : > { %1341 = vmatprep.subr.bf16.mxu0 %v1441_v20 }
 0x38d   : > { %1343 = vmatpush3.bf16.msra.mxu0 %v1567_v21 }
 0x38e   : > { %1344 = vmatprep.subr.bf16.mxu0 %v1441_v20 }
 0x391   : > { %1346 = vmatpush3.bf16.msra.mxu0 %v1581_v23 }
 0x392   : > { %1347 = vmatprep.subr.bf16.mxu0 %v1441_v20 }
 0x395   : > { %1349 = vmatpush3.bf16.msra.mxu0 %v1589_v24 }
 0x396   : > { %1350 = vmatprep.subr.bf16.mxu0 %v1441_v20 }
 0x399   : > { %1352 = vmatpush3.bf16.msra.mxu0 %v1597_v25 }
 0x39a   : > { %1353 = vmatprep.subr.bf16.mxu0 %v1441_v20 }
 0x39d   : > { %1355 = vmatpush3.bf16.msra.mxu0 %v1605_v26 }
 0x39e   : > { %1356 = vmatprep.subr.bf16.mxu0 %v1441_v20 }
 0x3a1   : > { %1358 = vmatpush3.bf16.msra.mxu0 %v1613_v27 }
 0x3a2   : > { %1359 = vmatprep.subr.bf16.mxu0 %v1441_v20 }
 0x3a5   : > { %1361 = vmatpush3.bf16.msra.mxu0 %v1621_v28 }
 0x45b   : > { %v486_v51 = vpop.f32.mrb[4].mxu0 }
 0x45c   : > { %v487_v52 = vadd.f32 %v486_v51, %v1542_v17  ;;  %v1088_v53 = vpop.f32.mrb[5].mxu0 }
 0x45e   : > { %v495_v54 = vsel %vm494_vm5, %v487_v52, %v1745_v49 }
 0x45f   : > { %1122 = vmatmul.mubr.f32.vlgmr.msra.gmra.mrb[4].mxu1 %v495_v54 }
 0x460   : > { %1364 = vmatpush3.bf16.msra.mxu1 %v1561_v19  ;;  %1191 = vmatprep.mubr.msk.f32.mxu1 %vm1442_vm0, %v1443_v22  ;;  %v724_v22 = vstv %s723_s29 }
 0x461   : > { %1365 = vmatprep.subr.bf16.mxu1 %v1441_v20  ;;  %vm725_vm8 = vcmp.eq.s32.totalorder %v724_v22, 1 }
 0x464   : > { %1367 = vmatpush3.bf16.msra.mxu1 %v1567_v21 }
 0x465   : > { %1368 = vmatprep.subr.bf16.mxu1 %v1441_v20 }
 0x468   : > { %1370 = vmatpush3.bf16.msra.mxu1 %v1581_v23 }
 0x469   : > { %1371 = vmatprep.subr.bf16.mxu1 %v1441_v20 }
 0x46c   : > { %1373 = vmatpush3.bf16.msra.mxu1 %v1589_v24 }
 0x46d   : > { %1374 = vmatprep.subr.bf16.mxu1 %v1441_v20 }
 0x470   : > { %1376 = vmatpush3.bf16.msra.mxu1 %v1597_v25 }
 0x471   : > { %1377 = vmatprep.subr.bf16.mxu1 %v1441_v20 }
 0x474   : > { %1379 = vmatpush3.bf16.msra.mxu1 %v1605_v26 }
 0x475   : > { %1380 = vmatprep.subr.bf16.mxu1 %v1441_v20 }
 0x478   : > { %1382 = vmatpush3.bf16.msra.mxu1 %v1613_v27 }
 0x479   : > { %1383 = vmatprep.subr.bf16.mxu1 %v1441_v20  ;;  %v188_v20 = vsel %vm1650_vm1, %v1431_v18, %v1435_v16 }
 0x47a   : > { %v265_v21 = vsel %vm263_vm2, %v1658_v34, %v188_v20 }
 0x47b   : > { %v342_v23 = vsel %vm340_vm3, %v1687_v39, %v265_v21 }
 0x47c   : > { %1385 = vmatpush3.bf16.msra.mxu1 %v1621_v28  ;;  %v419_v24 = vsel %vm417_vm4, %v1716_v44, %v342_v23 }
 0x47d   : > { %v496_v25 = vsel %vm494_vm5, %v1745_v49, %v419_v24 }
 0x47e   : > { %v573_v16 = vsel %vm571_vm6, %v495_v54, %v496_v25 }
 0x532   : > { %v563_v56 = vpop.f32.mrb[4].mxu1 }
 0x533   : > { %v564_v57 = vadd.f32 %v563_v56, %v1542_v17  ;;  %v1123_v58 = vpop.f32.mrb[5].mxu1 }
 0x535   : > { %v572_v59 = vsel %vm571_vm6, %v564_v57, %v495_v54 }
 0x536   : > { %1157 = vmatmul.mubr.f32.vlgmr.msra.gmra.mrb[6].mxu0 %v572_v59  ;;  %v650_v28 = vsel %vm648_vm7, %v572_v59, %v573_v16 }
 0x609   : > { %v640_v61 = vpop.f32.mrb[6].mxu0 }
 0x60a   : > { %v641_v62 = vadd.f32 %v640_v61, %v1542_v17  ;;  %v1158_v63 = vpop.f32.mrb[7].mxu0 }
 0x60c   : > { %v649_v19 = vsel %vm648_vm7, %v641_v62, %v572_v59 }
 0x60d   : > { %1192 = vmatmul.mubr.f32.vlgmr.msra.gmra.mrb[6].mxu1 %v649_v19  ;;  %v727_v30 = vsel %vm725_vm8, %v649_v19, %v650_v28  }
 0x60e   : > { %v1831_v16 = vmov %v727_v30 }
 0x6e0   : > { %v717_v26 = vpop.f32.mrb[6].mxu1 }
 0x6e1   : > { %v718_v18 = vadd.f32 %v717_v26, %v1542_v17  ;;  %v1193_v27 = vpop.f32.mrb[7].mxu1 }
 0x6e3   : > { %v726_v29 = vsel %vm725_vm8, %v718_v18, %v649_v19  }
 0x6e4   : > { %v728_v31 = vsub.f32 %v726_v29, %v727_v30  ;;  %v1830_v18 = vmov %v726_v29 }
 0x6e6   : > { %v729_v32 = vmul.f32 %v728_v31, %v728_v31 }
 0x6e8   : > { %v731_v33 = vsel %vm730_vm9, %v729_v32, 0.0 }
 0x6e9   : > { %732 = vadd.xlane.f32.xlu0 %v731_v33 }
 0x776   : > { %v733_v34 = vpop.xlane.xlu0 %732 }
 0x777   : > { %v734_v35 = vrot.slane %v733_v34, 4 }
 0x779   : > { %v735_v36 = vadd.f32 %v734_v35, %v733_v34 }
 0x77b   : > { %v736_v37 = vrot.slane %v735_v36, 2 }
 0x77d   : > { %v737_v38 = vadd.f32 %v736_v37, %v735_v36 }
 0x77f   : > { %v738_v39 = vrot.slane %v737_v38, 1 }
 0x781   : > { %v739_v40 = vadd.f32 %v738_v39, %v737_v38 }
 0x783   : > { %1386 = vpush %v739_v40 }
 0x7b4   : > { %s1387_s30 = spop %1386 }
 0x7b5   : > { %p741_p8 = scmp.lt.f32.partialorder %s1387_s30, 1e-12 }
 0x7b7   : > { %s743_s3 = scalar_select %p741_p8, 1, 0 }
 0x7b9   : > { %p108_p10 = scmp.eq.s32.totalorder %s743_s3, 0 }
 0x7bb   : > { %p109_p11 = pnand %p108_p10, %p107_p9 }
 0x7bc   :  { %v746_v41 = vstv (%p109_p11), %s743_s3 }
 0x7bd   :  { %112 = sbr.rel (!%p109_p11) target bundleno = 11 (0xb), region = 74  ;;  %vm747_vm10 = vcmp.eq.s32.totalorder (%p109_p11), %v746_v41, 1 }
 0x7be   :  { %v748_v42 = vsel (%p109_p11), %vm747_vm10, %v727_v30, %v726_v29 }
 0x7bf   :  { %749 = vst [vmem:[%s1826_s2] sm:$0x1] (%p109_p11), %v748_v42 }

</bundles_post_ra>
